<compile_context>
chip_gen: v5e
topology: v5e:2x2
jax: 0.10.0
libtpu: 0.0.40
codegen_flags: <defaults>
</compile_context>

<pallas_src>
import functools

import numpy as np
import jax
import jax.numpy as jnp
from jax import lax
from jax.experimental import pallas as pl
from jax.experimental.pallas import tpu as pltpu


def _bert_output_kernel(h_ref, res_ref, w_ref, p_ref, o_ref, *, eps, compute_dtype):
    """One row-tile grid step: full matmul over I + fused epilogue.

    h_ref:   (tm, I)  hidden_states rows (HBM dtype; cast to compute_dtype here)
    res_ref: (tm, H)  residual rows
    w_ref:   (I, H)   resident weight (compute_dtype), constant across the grid
    p_ref:   (3, H)   f32 [bias; gamma; beta]
    o_ref:   (tm, H)  output rows
    """
    # MXU matmul with f32 accumulation; in-kernel cast of the activation tile.
    x = jnp.dot(h_ref[...].astype(compute_dtype), w_ref[...],
                preferred_element_type=jnp.float32)

    p = p_ref[...]                                   # (3, H) f32
    # Dropout (eval mode) is identity; add bias + residual in f32.
    x = x + p[0:1, :] + res_ref[...].astype(jnp.float32)

    # LayerNorm: both reductions issued from the same x (E[x^2] - mean^2 form).
    inv_h = 1.0 / x.shape[-1]
    mean = jnp.sum(x, axis=-1, keepdims=True) * inv_h
    mean_sq = jnp.sum(x * x, axis=-1, keepdims=True) * inv_h
    var = jnp.maximum(mean_sq - mean * mean, 0.0)
    y = (x - mean) * lax.rsqrt(var + eps) * p[1:2, :] + p[2:3, :]
    o_ref[...] = y.astype(o_ref.dtype)


def bert_output(hidden_states, input_tensor, weight_t, bias, gamma, beta, *,
                eps=1e-12, row_tile=None, compute_dtype=jnp.bfloat16,
                out_dtype=None):
    """hidden_states: [R, I], input_tensor: [R, H], weight_t: [I, H]
    (nn.Linear weight transposed), bias/gamma/beta: [H] or [1, H]. Returns [R, H]."""
    R, I = hidden_states.shape
    R2, H = input_tensor.shape
    assert R == R2 and weight_t.shape == (I, H)
    out_dtype = input_tensor.dtype if out_dtype is None else out_dtype

    itemsize = lambda dt: np.dtype(dt).itemsize

    # Generation-aware defaults: v5e/v6e have 128 MiB physical VMEM (big tiles,
    # big budget); v7x has 64 MiB (conservative).  Falls back to the
    # conservative setting if the query is unavailable.
    try:
        phys_vmem = int(getattr(pltpu.get_tpu_info(), "vmem_capacity_bytes", 0)) or (64 << 20)
    except Exception:  # pragma: no cover - defensive
        phys_vmem = 64 << 20
    if phys_vmem >= (96 << 20):
        default_row_tile, vmem_cap = 512, (96 << 20)
    else:
        default_row_tile, vmem_cap = 256, (44 << 20)
    row_tile = default_row_tile if row_tile is None else row_tile

    # Row alignment from the MXU compute dtype (bf16 packs 16 rows per sublane
    # group) and the output store dtype.
    def _row_align(dt):
        sz = itemsize(dt)
        return 8 if sz >= 4 else (16 if sz == 2 else 32)
    row_align = max(_row_align(compute_dtype), _row_align(out_dtype))

    # MXU weight operand in the compute dtype.
    # TODO(synk): in a real model, cast the weight once at parameter-init time.
    w = weight_t if weight_t.dtype == compute_dtype else weight_t.astype(compute_dtype)
    # Pack bias / gamma / beta into one (3, H) f32 operand (single tiny DMA).
    params = jnp.stack([bias.reshape(H), gamma.reshape(H), beta.reshape(H)]
                       ).astype(jnp.float32)

    def est_bytes(tm):
        # Double-buffered pipeline tiles.  The weight's block index is constant
        # across the grid, so it is DMA'd only once, but its default allocation
        # is still 2x its size (accounted for here).
        return (2 * tm * I * itemsize(hidden_states.dtype)     # activation tiles
                + 2 * tm * H * itemsize(input_tensor.dtype)    # residual tiles
                + 2 * I * H * itemsize(compute_dtype)          # resident weight
                + 2 * 3 * H * 4                                # bias/gamma/beta
                + 2 * tm * H * itemsize(out_dtype))            # output tiles

    aligned_down = lambda v, a: max(a, (v // a) * a)
    if R <= row_tile:
        tm = R                                # block == full dim (always legal)
    else:
        tm = aligned_down(row_tile, row_align)
        # Shrink the row tile if the working set would not fit the VMEM budget.
        while tm > row_align and est_bytes(tm) > vmem_cap - (4 << 20):
            tm = aligned_down(tm // 2, row_align)

    # Pad the row dimension up to a tile multiple (output sliced afterwards)
    # instead of falling back to a whole-dimension block.
    n_row_blocks = -(-R // tm)
    R_pad = n_row_blocks * tm
    h_in, res_in = hidden_states, input_tensor
    if R_pad != R:
        h_in = jnp.pad(h_in, ((0, R_pad - R), (0, 0)))
        res_in = jnp.pad(res_in, ((0, R_pad - R), (0, 0)))

    vmem_limit = int(min(est_bytes(tm) + (8 << 20), vmem_cap))

    cost = pl.CostEstimate(
        flops=2 * R_pad * I * H + 10 * R_pad * H,
        transcendentals=R_pad,  # one rsqrt per row
        bytes_accessed=(R_pad * I * itemsize(hidden_states.dtype)
                        + R_pad * H * itemsize(input_tensor.dtype)
                        + I * H * itemsize(compute_dtype)       # weight read once
                        + 3 * H * 4
                        + R_pad * H * itemsize(out_dtype)))

    kernel = functools.partial(_bert_output_kernel, eps=eps,
                               compute_dtype=compute_dtype)

    out = pl.pallas_call(
        kernel,
        out_shape=jax.ShapeDtypeStruct((R_pad, H), out_dtype),
        grid_spec=pltpu.PrefetchScalarGridSpec(
            num_scalar_prefetch=0,
            grid=(n_row_blocks,),
            in_specs=[
                pl.BlockSpec((tm, I), lambda i: (i, 0)),   # hidden_states rows
                pl.BlockSpec((tm, H), lambda i: (i, 0)),   # residual rows
                pl.BlockSpec((I, H), lambda i: (0, 0)),    # resident weight (DMA'd once)
                pl.BlockSpec((3, H), lambda i: (0, 0)),    # bias / gamma / beta
            ],
            out_specs=pl.BlockSpec((tm, H), lambda i: (i, 0)),
        ),
        compiler_params=pltpu.CompilerParams(
            dimension_semantics=("parallel",),
            vmem_limit_bytes=vmem_limit),
        cost_estimate=cost,
    )(h_in, res_in, w, params)

    return out if R_pad == R else out[:R]


def reference(hidden_states, input_tensor, weight_t, bias, gamma, beta, *,
              eps=1e-12, compute_dtype=jnp.float32):
    """Pure-JAX reference (standard centered-variance LayerNorm) matching the
    kernel's numerics: matmul operands in compute_dtype, f32 accumulation,
    bias/residual/LayerNorm in f32."""
    hf = hidden_states.astype(compute_dtype).astype(jnp.float32)
    wf = weight_t.astype(compute_dtype).astype(jnp.float32)
    x = hf @ wf + bias.reshape(1, -1).astype(jnp.float32)
    x = x + input_tensor.astype(jnp.float32)
    mean = jnp.mean(x, axis=-1, keepdims=True)
    var = jnp.mean((x - mean) ** 2, axis=-1, keepdims=True)
    return ((x - mean) * lax.rsqrt(var + eps)
            * gamma.reshape(1, -1).astype(jnp.float32)
            + beta.reshape(1, -1).astype(jnp.float32))


if __name__ == "__main__":
    eps = 1e-12
    key = jax.random.PRNGKey(0)

    def run_case(batch, seq, hidden, intermediate, compute_dtype,
                 residual_dtype, out_dtype, row_tile, tol):
        ks = jax.random.split(jax.random.fold_in(key, hidden * 131 + intermediate), 6)
        hs = jax.random.normal(ks[0], (batch, seq, intermediate), jnp.float32)
        res = jax.random.normal(ks[1], (batch, seq, hidden), jnp.float32)
        res = res.astype(residual_dtype)
        # nn.Linear(intermediate, hidden): weight [hidden, intermediate]; pass transposed.
        weight = jax.random.normal(ks[2], (hidden, intermediate), jnp.float32) * 0.02
        weight_t = weight.T                                   # [intermediate, hidden]
        bias = jax.random.normal(ks[3], (hidden,), jnp.float32) * 0.02
        gamma = 1.0 + 0.01 * jax.random.normal(ks[4], (hidden,), jnp.float32)
        beta = 0.01 * jax.random.normal(ks[5], (hidden,), jnp.float32)

        # Flatten [batch, seq, *] -> [rows, *] for the kernel.
        h2d = hs.reshape(batch * seq, intermediate)
        r2d = res.reshape(batch * seq, hidden)

        out = bert_output(h2d, r2d, weight_t, bias, gamma, beta, eps=eps,
                          row_tile=row_tile, compute_dtype=compute_dtype,
                          out_dtype=out_dtype)
        out = jax.block_until_ready(out).reshape(batch, seq, hidden)

        ref = reference(h2d, r2d, weight_t, bias, gamma, beta, eps=eps,
                        compute_dtype=compute_dtype).reshape(batch, seq, hidden)
        assert jnp.allclose(out.astype(jnp.float32), ref, atol=tol, rtol=tol), \
            f"mismatch vs reference (H={hidden}, I={intermediate})"

    # 1) Small config consistent with the module: batch=2, seq=8, hidden=32,
    #    intermediate=64 (blocks equal full dims; f32 path, tight tolerance).
    run_case(batch=2, seq=8, hidden=32, intermediate=64,
             compute_dtype=jnp.float32, residual_dtype=jnp.float32,
             out_dtype=jnp.float32, row_tile=256, tol=1e-5)

    # 2) (8,128)-aligned config exercising the tiled row path with bf16 MXU
    #    operands, bf16 residual / output streams: rows=256, H=256, I=1024.
    run_case(batch=2, seq=128, hidden=256, intermediate=1024,
             compute_dtype=jnp.bfloat16, residual_dtype=jnp.bfloat16,
             out_dtype=jnp.bfloat16, row_tile=128, tol=5e-2)

    # 3) Non-divisible row count (rows=144, tile=128) exercising the pad + slice
    #    path instead of whole-dimension fallback.
    run_case(batch=2, seq=72, hidden=256, intermediate=512,
             compute_dtype=jnp.float32, residual_dtype=jnp.float32,
             out_dtype=jnp.float32, row_tile=128, tol=1e-4)

    print("KERNEL_OK")
</pallas_src>

<mosaic_0001>
module attributes {stable_mosaic.version = 11 : i64} {
  func.func @_bert_output_kernel(%arg0: i32, %arg1: memref<16x64xf32, #tpu.memory_space<vmem>>, %arg2: memref<16x32xf32, #tpu.memory_space<vmem>>, %arg3: memref<64x32xf32, #tpu.memory_space<vmem>>, %arg4: memref<3x32xf32, #tpu.memory_space<vmem>>, %arg5: memref<16x32xf32, #tpu.memory_space<vmem>>) attributes {dimension_semantics = [#tpu.dimension_semantics<parallel>], iteration_bounds = array<i64: 1>, scalar_prefetch = 0 : i64, scratch_operands = 0 : i64, tpu.core_type = #tpu.core_type<tc>, window_params = [{transform_indices = @transform_0, window_bounds = array<i64: 16, 64>}, {transform_indices = @transform_1, window_bounds = array<i64: 16, 32>}, {pipeline_mode = #tpu.pipeline_mode<synchronous>, transform_indices = @transform_2, window_bounds = array<i64: 64, 32>}, {pipeline_mode = #tpu.pipeline_mode<synchronous>, transform_indices = @transform_3, window_bounds = array<i64: 3, 32>}, {transform_indices = @transform_4, window_bounds = array<i64: 16, 32>}]} {
    %c0 = arith.constant 0 : index
    %c0_0 = arith.constant 0 : index
    %0 = vector.load %arg1[%c0, %c0_0] : memref<16x64xf32, #tpu.memory_space<vmem>>, vector<16x64xf32>
    %c0_1 = arith.constant 0 : index
    %c0_2 = arith.constant 0 : index
    %1 = vector.load %arg3[%c0_1, %c0_2] : memref<64x32xf32, #tpu.memory_space<vmem>>, vector<64x32xf32>
    %cst = arith.constant dense<0.000000e+00> : vector<16x32xf32>
    %2 = tpu.matmul %0, %1, %cst {dimension_numbers = #tpu.dot_dimension_numbers<[1], [0], [0], [1], [0, 0, 1, 1], [], []>} : vector<16x64xf32>, vector<64x32xf32>, vector<16x32xf32> -> vector<16x32xf32>
    %c0_3 = arith.constant 0 : index
    %c0_4 = arith.constant 0 : index
    %3 = vector.load %arg4[%c0_3, %c0_4] : memref<3x32xf32, #tpu.memory_space<vmem>>, vector<3x32xf32>
    %4 = vector.extract_strided_slice %3 {offsets = [0, 0], sizes = [1, 32], strides = [1, 1]} : vector<3x32xf32> to vector<1x32xf32>
    %5 = vector.broadcast %4 : vector<1x32xf32> to vector<16x32xf32>
    %6 = arith.addf %2, %5 : vector<16x32xf32>
    %c0_5 = arith.constant 0 : index
    %c0_6 = arith.constant 0 : index
    %7 = vector.load %arg2[%c0_5, %c0_6] : memref<16x32xf32, #tpu.memory_space<vmem>>, vector<16x32xf32>
    %8 = arith.addf %6, %7 : vector<16x32xf32>
    %cst_7 = arith.constant dense<0.000000e+00> : vector<16xf32>
    %9 = vector.multi_reduction <add>, %8, %cst_7 [1] : vector<16x32xf32> to vector<16xf32>
    %10 = vector.shape_cast %9 : vector<16xf32> to vector<16x1xf32>
    %cst_8 = arith.constant 3.125000e-02 : f32
    %11 = vector.broadcast %cst_8 : f32 to vector<16x1xf32>
    %12 = arith.mulf %10, %11 : vector<16x1xf32>
    %13 = arith.mulf %8, %8 : vector<16x32xf32>
    %cst_9 = arith.constant dense<0.000000e+00> : vector<16xf32>
    %14 = vector.multi_reduction <add>, %13, %cst_9 [1] : vector<16x32xf32> to vector<16xf32>
    %15 = vector.shape_cast %14 : vector<16xf32> to vector<16x1xf32>
    %cst_10 = arith.constant 3.125000e-02 : f32
    %16 = vector.broadcast %cst_10 : f32 to vector<16x1xf32>
    %17 = arith.mulf %15, %16 : vector<16x1xf32>
    %18 = arith.mulf %12, %12 : vector<16x1xf32>
    %19 = arith.subf %17, %18 : vector<16x1xf32>
    %cst_11 = arith.constant 0.000000e+00 : f32
    %20 = vector.broadcast %cst_11 : f32 to vector<16x1xf32>
    %21 = arith.maximumf %19, %20 : vector<16x1xf32>
    %22 = vector.broadcast %12 : vector<16x1xf32> to vector<16x32xf32>
    %23 = arith.subf %8, %22 : vector<16x32xf32>
    %cst_12 = arith.constant 9.99999996E-13 : f32
    %24 = vector.broadcast %cst_12 : f32 to vector<16x1xf32>
    %25 = arith.addf %21, %24 : vector<16x1xf32>
    %26 = math.rsqrt %25 : vector<16x1xf32>
    %27 = vector.broadcast %26 : vector<16x1xf32> to vector<16x32xf32>
    %28 = arith.mulf %23, %27 : vector<16x32xf32>
    %29 = vector.extract_strided_slice %3 {offsets = [1, 0], sizes = [1, 32], strides = [1, 1]} : vector<3x32xf32> to vector<1x32xf32>
    %30 = vector.broadcast %29 : vector<1x32xf32> to vector<16x32xf32>
    %31 = arith.mulf %28, %30 : vector<16x32xf32>
    %32 = vector.extract_strided_slice %3 {offsets = [2, 0], sizes = [1, 32], strides = [1, 1]} : vector<3x32xf32> to vector<1x32xf32>
    %33 = vector.broadcast %32 : vector<1x32xf32> to vector<16x32xf32>
    %34 = arith.addf %31, %33 : vector<16x32xf32>
    %c0_13 = arith.constant 0 : index
    %c0_14 = arith.constant 0 : index
    %35 = vector.load %arg5[%c0_13, %c0_14] : memref<16x32xf32, #tpu.memory_space<vmem>>, vector<16x32xf32>
    tpu.vector_store %arg5[%c0_13, %c0_14], %34 {strides = array<i32>} : memref<16x32xf32, #tpu.memory_space<vmem>>, vector<16x32xf32>,
    return
  }
  func.func @transform_0(%arg0: i32) -> (i32, i32) {
    %c0_i32 = arith.constant 0 : i32
    %c0_i32_0 = arith.constant 0 : i32
    return %arg0, %c0_i32 : i32, i32
  }
  func.func @transform_1(%arg0: i32) -> (i32, i32) {
    %c0_i32 = arith.constant 0 : i32
    %c0_i32_0 = arith.constant 0 : i32
    return %arg0, %c0_i32 : i32, i32
  }
  func.func @transform_2(%arg0: i32) -> (i32, i32) {
    %c0_i32 = arith.constant 0 : i32
    %c0_i32_0 = arith.constant 0 : i32
    %c0_i32_1 = arith.constant 0 : i32
    return %c0_i32, %c0_i32_0 : i32, i32
  }
  func.func @transform_3(%arg0: i32) -> (i32, i32) {
    %c0_i32 = arith.constant 0 : i32
    %c0_i32_0 = arith.constant 0 : i32
    %c0_i32_1 = arith.constant 0 : i32
    return %c0_i32, %c0_i32_0 : i32, i32
  }
  func.func @transform_4(%arg0: i32) -> (i32, i32) {
    %c0_i32 = arith.constant 0 : i32
    %c0_i32_0 = arith.constant 0 : i32
    return %arg0, %c0_i32 : i32, i32
  }
}

</mosaic_0001>

<bundles_post_ra>
// kernel: tpu_custom_call.1
= control target key start
LH: loop header
LB: loop body
LE: loop exit
PB: predicated region body
PF: predicated region fallthrough
CT: control target
= control target key end

     0   :  { %s265_s0 = inlined_call_operand.vmem [shape: f32[16,64], index: 0, kind: input, shape index: {}]   ;;  %s266_s1 = inlined_call_operand.vmem [shape: f32[16,32], index: 1, kind: input, shape index: {}]   ;;  %s267_s2 = inlined_call_operand.vmem [shape: f32[64,32], index: 2, kind: input, shape index: {}]   ;;  %s268_s3 = inlined_call_operand.vmem [shape: f32[3,32], index: 3, kind: input, shape index: {}]   ;;  %s269_s4 = inlined_call_operand.hbm [shape: f32[16,32], index: 4, kind: output, shape index: {}]  }
   0x1   :  { %v27_v0 = vld [vmem:[%s267_s2 + $0x38] sm:$0xff]  ;;  %v26_v1 = vld [vmem:[%s267_s2 + $0x30] sm:$0xff]  ;;  %v25_v2 = vld [vmem:[%s267_s2 + $0x28] sm:$0xff] }
   0x2   :  { %45 = vmatpush.msra.mxu0 %v27_v0  ;;  %143 = vmatpush.msra.mxu1 %v27_v0 }
   0x4   :  { %46 = vmatpush.msra.mxu0 %v26_v1  ;;  %144 = vmatpush.msra.mxu1 %v26_v1 }
   0x5   :  { %9 = vsyncpa [#allocation3], 0  ;;  %v24_v3 = vld [vmem:[%s267_s2 + $0x20] sm:$0xff]  ;;  %v23_v4 = vld [vmem:[%s267_s2 + $0x18] sm:$0xff]  ;;  %vm30_vm0 = vcmask 523264   ;;  %vm64_vm1 = vcmask 261120  }
   0x6   :  { %47 = vmatpush.msra.mxu0 %v25_v2  ;;  %145 = vmatpush.msra.mxu1 %v25_v2  ;;  %v22_v5 = vld [vmem:[%s267_s2 + $0x10] sm:$0xff]  ;;  %v21_v6 = vld [vmem:[%s267_s2 + $0x8] sm:$0xff]  ;;  %v20_v7 = vld [vmem:[%s267_s2] sm:$0xff]  ;;  %s129_s15 = sshll.u32 %s269_s4, 4  ;;  %s185_s16 = smov 128   ;;  %s130_s15 = int_to_ptr.hbm [resolvable:$true] %s129_s15 }
   0x7   :  { %v18_v8 = vld [vmem:[%s265_s0] sm:$0xff]  ;;  %v19_v9 = vld [vmem:[%s265_s0 + $0x8] sm:$0xff]  ;;  %s186_s17 = smov 8  }
   0x8   :  { %48 = vmatpush.msra.mxu0 %v24_v3  ;;  %146 = vmatpush.msra.mxu1 %v24_v3  ;;  %v245_v10 = vld [vmem:[%s268_s3] sm:$0x7]  ;;  %v61_v17 = vld [vmem:[%s266_s1 + $0x8] sm:$0xff] }
   0x9   :  { %v29_v11 = vperm.slane %v245_v10, 0  ;;  %v60_v13 = vld [vmem:[%s266_s1] sm:$0xff]  ;;  %v115_v49 = vperm.slane %v245_v10, 1  ;;  %v118_v53 = vperm.slane %v245_v10, 2  ;;  %s184_s1 = smov [#allocation2]  }
   0xa   :  { %49 = vmatpush.msra.mxu0 %v23_v4  ;;  %147 = vmatpush.msra.mxu1 %v23_v4  ;;  %s127_s3 = sshll.u32 %s184_s1, 4  ;;  %s128_s3 = int_to_ptr.vmem [resolvable:$true] %s127_s3 }
   0xc   :  { %50 = vmatpush.msra.mxu0 %v22_v5  ;;  %148 = vmatpush.msra.mxu1 %v22_v5 }
   0xe   :  { %51 = vmatpush.msra.mxu0 %v21_v6  ;;  %149 = vmatpush.msra.mxu1 %v21_v6 }
  0x10   :  { %52 = vmatpush.msra.mxu0 %v20_v7  ;;  %150 = vmatpush.msra.mxu1 %v20_v7 }
  0x11   :  { %141 = vmatmul.msk.f32.vlgmr.msra.gmra.mxu0 %vm30_vm0, %v18_v8  ;;  %142 = vmatmul.msk.f32.vlgmr.msra.gmra.mxu1 %vm30_vm0, %v19_v9 }
  0x8e   :  { %v54_v12 = vpop.f32.mrf.mxu0  ;;  %v57_v14 = vpop.f32.mrf.mxu1 }
  0x8f   :  { %v55_v15 = vadd.f32 %v54_v12, %v29_v11  ;;  %v58_v16 = vadd.f32 %v57_v14, %v29_v11 }
  0x91   :  { %v62_v18 = vadd.f32 %v60_v13, %v55_v15  ;;  %v63_v20 = vadd.f32 %v61_v17, %v58_v16 }
  0x93   :  { %v65_v19 = vsel %vm64_vm1, %v62_v18, 0.0  ;;  %v73_v21 = vmul.f32 %v62_v18, %v62_v18  ;;  %v74_v23 = vmul.f32 %v63_v20, %v63_v20  ;;  %v68_v24 = vsel %vm64_vm1, %v63_v20, 0.0 }
  0x94   :  { %66 = vadd.xlane.f32.xlu0 %v65_v19 }
  0x95   :  { %v75_v22 = vsel %vm64_vm1, %v73_v21, 0.0  ;;  %v78_v25 = vsel %vm64_vm1, %v74_v23, 0.0 }
  0x96   :  { %76 = vadd.xlane.f32.xlu1 %v75_v22 }
  0x9c   :  { %69 = vadd.xlane.f32.xlu0 %v68_v24 }
  0x9e   :  { %79 = vadd.xlane.f32.xlu1 %v78_v25 }
 0x107   :  { %v67_v26 = vpop.xlane.xlu0 %66 }
 0x108   :  { %v71_v27 = vmul.f32 0.03125, %v67_v26 }
 0x109   :  { %v77_v28 = vpop.xlane.xlu1 %76 }
 0x10a   :  { %v83_v29 = vmul.f32 %v71_v27, %v71_v27  ;;  %v81_v30 = vmul.f32 0.03125, %v77_v28  ;;  %v89_v50 = vsub.f32 %v62_v18, %v71_v27 }
 0x10c   :  { %v85_v31 = vsub.f32 %v81_v30, %v83_v29 }
 0x10e   :  { %v87_v32 = vmax.f32 %v85_v31, 0.0 }
 0x10f   :  { %v70_v33 = vpop.xlane.xlu0 %69 }
 0x110   :  { %v91_v34 = vadd.f32 1e-12, %v87_v32  ;;  %v72_v35 = vmul.f32 0.03125, %v70_v33 }
 0x111   :  { %v80_v36 = vpop.xlane.xlu1 %79 }
 0x112   :  { %154 = vrsqrt.f32 %v91_v34  ;;  %v84_v37 = vmul.f32 %v72_v35, %v72_v35  ;;  %v82_v38 = vmul.f32 0.03125, %v80_v36  ;;  %vm99_vm3 = vweird.f32 %v91_v34 }
 0x113   :  { %v90_v61 = vsub.f32 %v63_v20, %v72_v35 }
 0x114   :  { %v86_v39 = vsub.f32 %v82_v38, %v84_v37 }
 0x116   :  { %v88_v40 = vmax.f32 %v86_v39, 0.0 }
 0x118   :  { %v155_v41 = vpop.eup %154  ;;  %v92_v43 = vadd.f32 1e-12, %v88_v40 }
 0x119   :  { %v94_v42 = vmul.f32 %v155_v41, %v91_v34  ;;  %vm100_vm2 = vweird.f32 %v155_v41 }
 0x11a   :  { %156 = vrsqrt.f32 %v92_v43  ;;  %vm101_vm4 = vmor %vm99_vm3, %vm100_vm2  ;;  %vm109_vm6 = vweird.f32 %v92_v43 }
 0x11b   :  { %v95_v44 = vmul.f32 %v155_v41, %v94_v42 }
 0x11d   :  { %v96_v45 = vmul.f32 0.5, %v95_v44 }
 0x11f   :  { %v97_v46 = vsub.f32 1.5, %v96_v45 }
 0x120   :  { %v157_v47 = vpop.eup %156 }
 0x121   :  { %v98_v48 = vmul.f32 %v155_v41, %v97_v46  ;;  %v104_v51 = vmul.f32 %v157_v47, %v92_v43  ;;  %vm110_vm5 = vweird.f32 %v157_v47 }
 0x122   :  { %vm111_vm7 = vmor %vm109_vm6, %vm110_vm5 }
 0x123   :  { %v102_v52 = vsel %vm101_vm4, %v155_v41, %v98_v48  ;;  %v105_v55 = vmul.f32 %v157_v47, %v104_v51 }
 0x124   :  { %v113_v54 = vmul.f32 %v102_v52, %v89_v50 }
 0x125   :  { %v106_v57 = vmul.f32 0.5, %v105_v55 }
 0x126   :  { %v116_v56 = vmul.f32 %v115_v49, %v113_v54 }
 0x127   :  { %v107_v58 = vsub.f32 1.5, %v106_v57 }
 0x128   :  { %v119_v59 = vadd.f32 %v118_v53, %v116_v56 }
 0x129   :  { %v108_v60 = vmul.f32 %v157_v47, %v107_v58 }
 0x12a   :  { %121 = vst.msk [vmem:[#allocation2] sm:$0xff] %vm64_vm1, %v119_v59 }
 0x12b   :  { %v112_v62 = vsel %vm111_vm7, %v157_v47, %v108_v60 }
 0x12c   :  { %v114_v63 = vmul.f32 %v112_v62, %v90_v61 }
 0x12e   :  { %v117_v0 = vmul.f32 %v115_v49, %v114_v63 }
 0x130   :  { %v120_v1 = vadd.f32 %v118_v53, %v117_v0 }
 0x132   :  { %122 = vst.msk [vmem:[#allocation2 + $0x8] sm:$0xff] %vm64_vm1, %v120_v1 }
 0x133   :  { %135 = dma.vmem_to_hbm [thread:$0]  %s128_s3, 256, %s130_s15, [#allocation3], %s185_s16, %s185_s16, %s186_s17  }
 0x134   :  { %182 = dma.done.wait [#allocation3], 256  }
 0x135   :  { %183 = vsyncadd [#allocation3], 4294967040 }
 0x136   :  { %140 = vsyncpa [#allocation3], 1 }

</bundles_post_ra>
